<compile_context>
chip_gen: v6e
topology: v6e:2x2x1
jax: 0.10.0
libtpu: 0.0.40
codegen_flags: <defaults>
</compile_context>

<pallas_src>
import numpy as np
import jax
import jax.numpy as jnp
from jax.experimental import pallas as pl
from jax.experimental.pallas import tpu as pltpu

FILT_SIZE = 3
STRIDE = 2
PAD_OFF = 0
# outer([1,2,1],[1,2,1]) / 16  ==  ([1,2,1]) (x) ([1,2,1]) * 1/16  -> separable.
_INV_NORM = 1.0 / 16.0


def _blur_sep_kernel(xp_ref, o_ref, t_ref):
    """Separable 3x3 blur, stride 2.

    xp_ref: (Hp, Wp, Ct) reflection-padded input tile (channels-last, C on lanes)
    o_ref : (Ho, Wo, Ct) output tile
    t_ref : (Hp, Wo, Ct) f32 scratch holding the horizontal pass
    """
    Ho, Wo, _ = o_ref.shape
    # Horizontal [1,2,1], stride 2 along W (sublane-dim strided reads).
    t_ref[...] = (xp_ref[:, pl.ds(0, Wo, 2), :].astype(jnp.float32)
                  + 2.0 * xp_ref[:, pl.ds(1, Wo, 2), :].astype(jnp.float32)
                  + xp_ref[:, pl.ds(2, Wo, 2), :].astype(jnp.float32))
    # Vertical [1,2,1], stride 2 along H (major-dim strided reads), then /16.
    acc = (t_ref[pl.ds(0, Ho, 2), :, :]
           + 2.0 * t_ref[pl.ds(1, Ho, 2), :, :]
           + t_ref[pl.ds(2, Ho, 2), :, :])
    o_ref[...] = (acc * _INV_NORM).astype(o_ref.dtype)


def _channel_tile(C, Hp, Wp, itemsize, budget_bytes=4 << 20):
    """Full-C blocks when they fit the VMEM budget; otherwise a multiple of 128
    (lane width) so the BlockSpec lane-axis tiling stays legal."""
    if Hp * Wp * C * itemsize <= budget_bytes or C % 128 != 0:
        return C
    ct = C
    while ct > 128 and ct % 256 == 0 and Hp * Wp * ct * itemsize > budget_bytes:
        ct //= 2
    return ct


def downsample(x):
    """x: (N, C, H, W) -> (N, C, Ho, Wo). Matches Downsample(filt_size=3, stride=2)."""
    N, C, H, W = x.shape
    pad = (FILT_SIZE - 1) // 2 + PAD_OFF                 # ReflectionPad2d([1,1,1,1])
    Hp, Wp = H + 2 * pad, W + 2 * pad
    Ho = (Hp - FILT_SIZE) // STRIDE + 1
    Wo = (Wp - FILT_SIZE) // STRIDE + 1

    # Channels-last internal layout; reflection pad kept as XLA glue.
    xt = jnp.transpose(x, (0, 2, 3, 1))                  # (N, H, W, C)
    xp = jnp.pad(xt, ((0, 0), (pad, pad), (pad, pad), (0, 0)), mode="reflect")

    itemsize = jnp.dtype(x.dtype).itemsize
    Ct = _channel_tile(C, Hp, Wp, itemsize)
    grid = (N, C // Ct)

    in_blk = Hp * Wp * Ct * itemsize
    out_blk = Ho * Wo * Ct * itemsize
    scratch_bytes = Hp * Wo * Ct * 4
    need = 2 * (in_blk + out_blk) + scratch_bytes + (2 << 20)
    vmem_limit = int(min(max(need, 32 << 20), 56 << 20))  # headroom under v7x's 64 MiB
    # TODO(synk): for very large feature maps where even a 128-channel block exceeds
    # the budget, add a spatial (H) grid axis with a 1-row halo instead of full-H blocks.

    out_t = pl.pallas_call(
        _blur_sep_kernel,
        out_shape=jax.ShapeDtypeStruct((N, Ho, Wo, C), x.dtype),
        grid=grid,
        in_specs=[pl.BlockSpec((None, Hp, Wp, Ct), lambda n, c: (n, 0, 0, c))],
        out_specs=pl.BlockSpec((None, Ho, Wo, Ct), lambda n, c: (n, 0, 0, c)),
        scratch_shapes=[pltpu.VMEM((Hp, Wo, Ct), jnp.float32)],
        compiler_params=pltpu.CompilerParams(
            dimension_semantics=("parallel", "parallel"),
            vmem_limit_bytes=vmem_limit,
        ),
    )(xp)

    return jnp.transpose(out_t, (0, 3, 1, 2))            # back to NCHW


def downsample_ref(x):
    """Pure-JAX reference: reflection pad + depthwise 3x3 stride-2 blur conv."""
    C = x.shape[1]
    xp = jnp.pad(x, ((0, 0), (0, 0), (1, 1), (1, 1)), mode="reflect")
    a = jnp.array([1.0, 2.0, 1.0], jnp.float32)
    f = a[:, None] * a[None, :]
    f = f / f.sum()
    filt = jnp.tile(f[None, None, :, :], (C, 1, 1, 1))   # (C, 1, 3, 3)
    return jax.lax.conv_general_dilated(
        xp, filt,
        window_strides=(STRIDE, STRIDE),
        padding="VALID",
        feature_group_count=C,
        dimension_numbers=("NCHW", "OIHW", "NCHW"),
    )


if __name__ == "__main__":
    key = jax.random.PRNGKey(0)
    x = jax.random.normal(key, (2, 4, 16, 16), dtype=jnp.float32)

    out = downsample(x)
    out = jax.block_until_ready(out)

    ref = jax.block_until_ready(downsample_ref(x))
    assert out.shape == ref.shape == (2, 4, 8, 8), (out.shape, ref.shape)
    np.testing.assert_allclose(np.asarray(out), np.asarray(ref), rtol=1e-5, atol=1e-5)

    print("KERNEL_OK")
</pallas_src>

<mosaic_0001>
module attributes {stable_mosaic.version = 11 : i64} {
  func.func @_blur_sep_kernel(%arg0: i32, %arg1: i32, %arg2: memref<1x18x18x4xf32, #tpu.memory_space<vmem>>, %arg3: memref<1x8x8x4xf32, #tpu.memory_space<vmem>>, %arg4: memref<18x8x4xf32, #tpu.memory_space<vmem>>) attributes {dimension_semantics = [#tpu.dimension_semantics<parallel>, #tpu.dimension_semantics<parallel>], iteration_bounds = array<i64: 2, 1>, scalar_prefetch = 0 : i64, scratch_operands = 1 : i64, tpu.core_type = #tpu.core_type<tc>, window_params = [{transform_indices = @transform_0, window_bounds = array<i64: 1, 18, 18, 4>}, {transform_indices = @transform_1, window_bounds = array<i64: 1, 8, 8, 4>}]} {
    %c0 = arith.constant 0 : index
    %c0_0 = arith.constant 0 : index
    %c0_1 = arith.constant 0 : index
    %c0_2 = arith.constant 0 : index
    %0 = tpu.strided_load %arg2[%c0, %c0_0, %c0_1, %c0_2] {strides = array<i32: 1, 1, 2, 1>} : memref<1x18x18x4xf32, #tpu.memory_space<vmem>>, vector<1x18x8x4xf32>
    %1 = vector.shape_cast %0 : vector<1x18x8x4xf32> to vector<18x8x4xf32>
    %c0_3 = arith.constant 0 : index
    %c0_4 = arith.constant 0 : index
    %c1 = arith.constant 1 : index
    %c0_5 = arith.constant 0 : index
    %2 = tpu.strided_load %arg2[%c0_3, %c0_4, %c1, %c0_5] {strides = array<i32: 1, 1, 2, 1>} : memref<1x18x18x4xf32, #tpu.memory_space<vmem>>, vector<1x18x8x4xf32>
    %3 = vector.shape_cast %2 : vector<1x18x8x4xf32> to vector<18x8x4xf32>
    %cst = arith.constant 2.000000e+00 : f32
    %4 = vector.broadcast %cst : f32 to vector<18x8x4xf32>
    %5 = arith.mulf %4, %3 : vector<18x8x4xf32>
    %6 = arith.addf %1, %5 : vector<18x8x4xf32>
    %c0_6 = arith.constant 0 : index
    %c0_7 = arith.constant 0 : index
    %c2 = arith.constant 2 : index
    %c0_8 = arith.constant 0 : index
    %7 = tpu.strided_load %arg2[%c0_6, %c0_7, %c2, %c0_8] {strides = array<i32: 1, 1, 2, 1>} : memref<1x18x18x4xf32, #tpu.memory_space<vmem>>, vector<1x18x8x4xf32>
    %8 = vector.shape_cast %7 : vector<1x18x8x4xf32> to vector<18x8x4xf32>
    %9 = arith.addf %6, %8 : vector<18x8x4xf32>
    %c0_9 = arith.constant 0 : index
    %c0_10 = arith.constant 0 : index
    %c0_11 = arith.constant 0 : index
    %10 = vector.load %arg4[%c0_9, %c0_10, %c0_11] : memref<18x8x4xf32, #tpu.memory_space<vmem>>, vector<18x8x4xf32>
    tpu.vector_store %arg4[%c0_9, %c0_10, %c0_11], %9 {strides = array<i32>} : memref<18x8x4xf32, #tpu.memory_space<vmem>>, vector<18x8x4xf32>,
    %c0_12 = arith.constant 0 : index
    %c0_13 = arith.constant 0 : index
    %c0_14 = arith.constant 0 : index
    %11 = tpu.strided_load %arg4[%c0_12, %c0_13, %c0_14] {strides = array<i32: 2, 1, 1>} : memref<18x8x4xf32, #tpu.memory_space<vmem>>, vector<8x8x4xf32>
    %c1_15 = arith.constant 1 : index
    %c0_16 = arith.constant 0 : index
    %c0_17 = arith.constant 0 : index
    %12 = tpu.strided_load %arg4[%c1_15, %c0_16, %c0_17] {strides = array<i32: 2, 1, 1>} : memref<18x8x4xf32, #tpu.memory_space<vmem>>, vector<8x8x4xf32>
    %cst_18 = arith.constant 2.000000e+00 : f32
    %13 = vector.broadcast %cst_18 : f32 to vector<8x8x4xf32>
    %14 = arith.mulf %13, %12 : vector<8x8x4xf32>
    %15 = arith.addf %11, %14 : vector<8x8x4xf32>
    %c2_19 = arith.constant 2 : index
    %c0_20 = arith.constant 0 : index
    %c0_21 = arith.constant 0 : index
    %16 = tpu.strided_load %arg4[%c2_19, %c0_20, %c0_21] {strides = array<i32: 2, 1, 1>} : memref<18x8x4xf32, #tpu.memory_space<vmem>>, vector<8x8x4xf32>
    %17 = arith.addf %15, %16 : vector<8x8x4xf32>
    %cst_22 = arith.constant 6.250000e-02 : f32
    %18 = vector.broadcast %cst_22 : f32 to vector<8x8x4xf32>
    %19 = arith.mulf %17, %18 : vector<8x8x4xf32>
    %c0_23 = arith.constant 0 : index
    %c0_24 = arith.constant 0 : index
    %c0_25 = arith.constant 0 : index
    %c0_26 = arith.constant 0 : index
    %20 = vector.load %arg3[%c0_23, %c0_24, %c0_25, %c0_26] : memref<1x8x8x4xf32, #tpu.memory_space<vmem>>, vector<1x8x8x4xf32>
    %21 = vector.shape_cast %20 : vector<1x8x8x4xf32> to vector<8x8x4xf32>
    %22 = vector.shape_cast %19 : vector<8x8x4xf32> to vector<1x8x8x4xf32>
    tpu.vector_store %arg3[%c0_23, %c0_24, %c0_25, %c0_26], %22 {strides = array<i32>} : memref<1x8x8x4xf32, #tpu.memory_space<vmem>>, vector<1x8x8x4xf32>,
    return
  }
  func.func @transform_0(%arg0: i32, %arg1: i32) -> (i32, i32, i32, i32) {
    %c0_i32 = arith.constant 0 : i32
    %c0_i32_0 = arith.constant 0 : i32
    %c0_i32_1 = arith.constant 0 : i32
    return %arg0, %c0_i32, %c0_i32_0, %arg1 : i32, i32, i32, i32
  }
  func.func @transform_1(%arg0: i32, %arg1: i32) -> (i32, i32, i32, i32) {
    %c0_i32 = arith.constant 0 : i32
    %c0_i32_0 = arith.constant 0 : i32
    %c0_i32_1 = arith.constant 0 : i32
    return %arg0, %c0_i32, %c0_i32_0, %arg1 : i32, i32, i32, i32
  }
}

</mosaic_0001>

<bundles_post_ra>
// kernel: tpu_custom_call.1
= control target key start
LH: loop header
LB: loop body
LE: loop exit
PB: predicated region body
PF: predicated region fallthrough
CT: control target
= control target key end

     0   :  { %s600_s6 = smov 0   ;;  %s602_s7 = smov 0   ;;  %s725_s0 = inlined_call_operand.vmem [shape: f32[2,18,18,4], index: 0, kind: input, shape index: {}]   ;;  %s726_s1 = inlined_call_operand.vmem [shape: f32[2,8,8,4], index: 1, kind: output, shape index: {}]  }
   0x1   :  { %s604_s8 = smov 0  }
   0x2 LB: > { %s23_s9 = sadd.s32 1, %s584_s7  ;;  %p481_p0 = scmp.ge.s32.totalorder %s588_s8, 1  ;;  %s588_s8 = sphi %s604_s8, %s11_s8   ;;  %s584_s7 = sphi %s602_s7, %s728_s7   ;;  %s580_s6 = sphi %s600_s6, %s727_s6  }
   0x3   : > { %p25_p1 = scmp.ge.s32.totalorder %s23_s9, 2  ;;  %p106_p2 = scmp.lt.s32.totalorder %s588_s8, 3 }
   0x5   : > { %s730_s9 = smov (%p25_p1, %s23_s9), 0  ;;  %p107_p3 = pnand %p481_p0, %p106_p2 }
   0x6   : > { %p132_p4 = scmp.lt.s32.totalorder (!%p107_p3), %s580_s6, 1 }
   0x7   : > { %110 = sbr.rel (%p107_p3) target bundleno = 58 (0x3a), region = 24 }
   0xc   : > { %s732_s6 = smov (!%p132_p4, %s580_s6), 1  ;;  %vm309_vm0 = vcmask 31744  }
   0xd   : > { %s541_s10 = smul.u32 432, %s732_s6  ;;  %s540_s14 = sshll.u32 %s732_s6, 6 }
   0xe   : > { %s698_s17 = scalar_lea.vmem %s726_s1, %s540_s14 }
   0xf   : > { %s624_s13 = scalar_lea.vmem %s725_s0, %s541_s10 }
  0x10   : > { %v485_v0 = vld [vmem:[%s624_s13 + $0x18] ss:$2 sm:$0xff]  ;;  %v503_v1 = vld [vmem:[%s624_s13 + $0x19] ss:$2 sm:$0xff]  ;;  %v487_v3 = vld [vmem:[%s624_s13 + $0x48] ss:$2 sm:$0xff] }
  0x11   : > { %v220_v2 = vmul.f32 2.0, %v503_v1  ;;  %v505_v4 = vld [vmem:[%s624_s13 + $0x49] ss:$2 sm:$0xff]  ;;  %v521_v5 = vld [vmem:[%s624_s13 + $0x1a] ss:$2 sm:$0xff] }
  0x12   : > { %v222_v6 = vmul.f32 2.0, %v505_v4  ;;  %v523_v7 = vld [vmem:[%s624_s13 + $0x4a] ss:$2 sm:$0xff]  ;;  %v507_v10 = vld [vmem:[%s624_s13 + $0x79] ss:$2 sm:$0xff] }
  0x13   : > { %v238_v8 = vadd.f32 %v485_v0, %v220_v2  ;;  %v489_v9 = vld [vmem:[%s624_s13 + $0x78] ss:$2 sm:$0xff]  ;;  %v224_v13 = vmul.f32 2.0, %v507_v10  ;;  %v491_v14 = vld [vmem:[%s624_s13 + $0xa8] ss:$2 sm:$0xff] }
  0x14   : > { %v525_v11 = vld [vmem:[%s624_s13 + $0x7a] ss:$2 sm:$0xff]  ;;  %v240_v12 = vadd.f32 %v487_v3, %v222_v6  ;;  %v509_v15 = vld [vmem:[%s624_s13 + $0xa9] ss:$2 sm:$0xff]  ;;  %v511_v19 = vld [vmem:[%s624_s13 + $0xd9] ss:$2 sm:$0xff] }
  0x15   : > { %v292_v16 = vadd.f32 %v521_v5, %v238_v8  ;;  %v226_v17 = vmul.f32 2.0, %v509_v15  ;;  %v493_v18 = vld [vmem:[%s624_s13 + $0xd8] ss:$2 sm:$0xff]  ;;  %v242_v21 = vadd.f32 %v489_v9, %v224_v13  ;;  %v228_v23 = vmul.f32 2.0, %v511_v19  ;;  %v495_v26 = vld [vmem:[%s624_s13 + $0x108] ss:$2 sm:$0xff] }
  0x16   : > { %v294_v20 = vadd.f32 %v523_v7, %v240_v12  ;;  %v527_v22 = vld [vmem:[%s624_s13 + $0xaa] ss:$2 sm:$0xff]  ;;  %v529_v24 = vld [vmem:[%s624_s13 + $0xda] ss:$2 sm:$0xff]  ;;  %v513_v27 = vld [vmem:[%s624_s13 + $0x109] ss:$2 sm:$0xff] }
  0x17   : > { %311 = vst.msk [vmem:[#allocation2 + $0x8] sm:$0xff] %vm309_vm0, %v292_v16  ;;  %v244_v25 = vadd.f32 %v491_v14, %v226_v17  ;;  %v531_v28 = vld [vmem:[%s624_s13 + $0x10a] ss:$2 sm:$0xff]  ;;  %v296_v29 = vadd.f32 %v525_v11, %v242_v21  ;;  %v246_v30 = vadd.f32 %v493_v18, %v228_v23  ;;  %v230_v31 = vmul.f32 2.0, %v513_v27  ;;  %v515_v33 = vld [vmem:[%s624_s13 + $0x139] ss:$2 sm:$0xff] }
  0x18   : > { %313 = vst.msk [vmem:[#allocation2 + $0x18] sm:$0xff] %vm309_vm0, %v294_v20  ;;  %v497_v32 = vld [vmem:[%s624_s13 + $0x138] ss:$2 sm:$0xff]  ;;  %v232_v35 = vmul.f32 2.0, %v515_v33  ;;  %v499_v36 = vld [vmem:[%s624_s13 + $0x168] ss:$2 sm:$0xff] }
  0x19   : > { %v298_v34 = vadd.f32 %v527_v22, %v244_v25  ;;  %v517_v37 = vld [vmem:[%s624_s13 + $0x169] ss:$2 sm:$0xff]  ;;  %315 = vst.msk [vmem:[#allocation2 + $0x28] sm:$0xff] %vm309_vm0, %v296_v29  ;;  %v300_v38 = vadd.f32 %v529_v24, %v246_v30  ;;  %v248_v39 = vadd.f32 %v495_v26, %v230_v31  ;;  %v533_v40 = vld [vmem:[%s624_s13 + $0x13a] ss:$2 sm:$0xff] }
  0x1a   : > { %v234_v41 = vmul.f32 2.0, %v517_v37  ;;  %v535_v42 = vld [vmem:[%s624_s13 + $0x16a] ss:$2 sm:$0xff]  ;;  %v250_v43 = vadd.f32 %v497_v32, %v232_v35  ;;  %v502_v45 = vld [vmem:[%s624_s13 + $0x1] ss:$2 sm:$0xff] }
  0x1b   : > { %317 = vst.msk [vmem:[#allocation2 + $0x38] sm:$0xff] %vm309_vm0, %v298_v34  ;;  %v148_v44 = vld [vmem:[%s624_s13] ss:$2 sm:$0xff]  ;;  %319 = vst.msk [vmem:[#allocation2 + $0x48] sm:$0xff] %vm309_vm0, %v300_v38  ;;  %v302_v47 = vadd.f32 %v531_v28, %v248_v39  ;;  %v219_v49 = vmul.f32 2.0, %v502_v45 }
  0x1c   : > { %v520_v46 = vld [vmem:[%s624_s13 + $0x2] ss:$2 sm:$0xff]  ;;  %v252_v48 = vadd.f32 %v499_v36, %v234_v41  ;;  %v504_v51 = vld [vmem:[%s624_s13 + $0x31] ss:$2 sm:$0xff]  ;;  %v304_v52 = vadd.f32 %v533_v40, %v250_v43  ;;  %v506_v55 = vld [vmem:[%s624_s13 + $0x61] ss:$2 sm:$0xff] }
  0x1d   : > { %v486_v50 = vld [vmem:[%s624_s13 + $0x30] ss:$2 sm:$0xff]  ;;  %v221_v53 = vmul.f32 2.0, %v504_v51  ;;  %v488_v54 = vld [vmem:[%s624_s13 + $0x60] ss:$2 sm:$0xff]  ;;  %321 = vst.msk [vmem:[#allocation2 + $0x58] sm:$0xff] %vm309_vm0, %v302_v47  ;;  %v237_v57 = vadd.f32 %v219_v49, %v148_v44 }
  0x1e   : > { %v306_v56 = vadd.f32 %v535_v42, %v252_v48  ;;  %v522_v58 = vld [vmem:[%s624_s13 + $0x32] ss:$2 sm:$0xff]  ;;  %v223_v59 = vmul.f32 2.0, %v506_v55  ;;  %v524_v60 = vld [vmem:[%s624_s13 + $0x62] ss:$2 sm:$0xff]  ;;  %323 = vst.msk [vmem:[#allocation2 + $0x68] sm:$0xff] %vm309_vm0, %v304_v52 }
  0x1f   : > { %v239_v61 = vadd.f32 %v486_v50, %v221_v53  ;;  %v490_v62 = vld [vmem:[%s624_s13 + $0x90] ss:$2 sm:$0xff]  ;;  %v508_v63 = vld [vmem:[%s624_s13 + $0x91] ss:$2 sm:$0xff]  ;;  %v291_v1 = vadd.f32 %v520_v46, %v237_v57  ;;  %v492_v4 = vld [vmem:[%s624_s13 + $0xc0] ss:$2 sm:$0xff] }
  0x20   : > { %v526_v0 = vld [vmem:[%s624_s13 + $0x92] ss:$2 sm:$0xff]  ;;  %325 = vst.msk [vmem:[#allocation2 + $0x78] sm:$0xff] %vm309_vm0, %v306_v56  ;;  %v241_v2 = vadd.f32 %v488_v54, %v223_v59  ;;  %v225_v3 = vmul.f32 2.0, %v508_v63  ;;  %v510_v5 = vld [vmem:[%s624_s13 + $0xc1] ss:$2 sm:$0xff] }
  0x21   : > { %v293_v6 = vadd.f32 %v522_v58, %v239_v61  ;;  %v227_v7 = vmul.f32 2.0, %v510_v5  ;;  %v494_v8 = vld [vmem:[%s624_s13 + $0xf0] ss:$2 sm:$0xff]  ;;  %v512_v9 = vld [vmem:[%s624_s13 + $0xf1] ss:$2 sm:$0xff]  ;;  %310 = vst.msk [vmem:[#allocation2] sm:$0xff] %vm309_vm0, %v291_v1 }
  0x22   : > { %v295_v10 = vadd.f32 %v524_v60, %v241_v2  ;;  %v243_v11 = vadd.f32 %v490_v62, %v225_v3  ;;  %v528_v12 = vld [vmem:[%s624_s13 + $0xc2] ss:$2 sm:$0xff]  ;;  %v229_v13 = vmul.f32 2.0, %v512_v9  ;;  %v530_v14 = vld [vmem:[%s624_s13 + $0xf2] ss:$2 sm:$0xff] }
  0x23   : > { %v337_v15 = vld [vmem:[#allocation2 + $0x8] sm:$0xff]  ;;  %312 = vst.msk [vmem:[#allocation2 + $0x10] sm:$0xff] %vm309_vm0, %v293_v6  ;;  %v245_v16 = vadd.f32 %v492_v4, %v227_v7  ;;  %v498_v23 = vld [vmem:[%s624_s13 + $0x150] ss:$2 sm:$0xff]  ;;  %v516_v24 = vld [vmem:[%s624_s13 + $0x151] ss:$2 sm:$0xff] }
  0x24   : > { %v496_v17 = vld [vmem:[%s624_s13 + $0x120] ss:$2 sm:$0xff]  ;;  %v514_v18 = vld [vmem:[%s624_s13 + $0x121] ss:$2 sm:$0xff]  ;;  %314 = vst.msk [vmem:[#allocation2 + $0x20] sm:$0xff] %vm309_vm0, %v295_v10  ;;  %v297_v20 = vadd.f32 %v526_v0, %v243_v11  ;;  %v247_v21 = vadd.f32 %v494_v8, %v229_v13  ;;  %v338_v25 = vld [vmem:[#allocation2 + $0x18] sm:$0xff] }
  0x25   : > { %v532_v19 = vld [vmem:[%s624_s13 + $0x122] ss:$2 sm:$0xff]  ;;  %v231_v22 = vmul.f32 2.0, %v514_v18  ;;  %v299_v26 = vadd.f32 %v528_v12, %v245_v16  ;;  %v233_v27 = vmul.f32 2.0, %v516_v24  ;;  %v518_v29 = vld [vmem:[%s624_s13 + $0x181] ss:$2 sm:$0xff] }
  0x26   : > { %v500_v28 = vld [vmem:[%s624_s13 + $0x180] ss:$2 sm:$0xff]  ;;  %316 = vst.msk [vmem:[#allocation2 + $0x30] sm:$0xff] %vm309_vm0, %v297_v20  ;;  %v301_v31 = vadd.f32 %v530_v14, %v247_v21  ;;  %v235_v34 = vmul.f32 2.0, %v518_v29  ;;  %v345_v36 = vmul.f32 2.0, %v337_v15  ;;  %v346_v38 = vmul.f32 2.0, %v338_v25 }
  0x27   : > { %v339_v30 = vld [vmem:[#allocation2 + $0x28] sm:$0xff]  ;;  %v249_v32 = vadd.f32 %v496_v17, %v231_v22  ;;  %v534_v33 = vld [vmem:[%s624_s13 + $0x152] ss:$2 sm:$0xff]  ;;  %318 = vst.msk [vmem:[#allocation2 + $0x40] sm:$0xff] %vm309_vm0, %v299_v26  ;;  %v251_v37 = vadd.f32 %v498_v23, %v233_v27 }
  0x28   : > { %v536_v35 = vld [vmem:[%s624_s13 + $0x182] ss:$2 sm:$0xff]  ;;  %v340_v39 = vld [vmem:[#allocation2 + $0x38] sm:$0xff]  ;;  %320 = vst.msk [vmem:[#allocation2 + $0x50] sm:$0xff] %vm309_vm0, %v301_v31  ;;  %v253_v41 = vadd.f32 %v500_v28, %v235_v34  ;;  %v347_v42 = vmul.f32 2.0, %v339_v30 }
  0x29   : > { %v303_v40 = vadd.f32 %v532_v19, %v249_v32  ;;  %v341_v43 = vld [vmem:[#allocation2 + $0x48] sm:$0xff]  ;;  %v305_v44 = vadd.f32 %v534_v33, %v251_v37  ;;  %v328_v45 = vld [vmem:[#allocation2] sm:$0xff]  ;;  %v342_v46 = vld [vmem:[#allocation2 + $0x58] sm:$0xff]  ;;  %v348_v50 = vmul.f32 2.0, %v340_v39 }
  0x2a   : > { %v307_v47 = vadd.f32 %v536_v35, %v253_v41  ;;  %v353_v48 = vadd.f32 %v345_v36, %v328_v45  ;;  %v362_v49 = vld [vmem:[#allocation2 + $0x10] sm:$0xff]  ;;  %v349_v53 = vmul.f32 2.0, %v341_v43  ;;  %v343_v54 = vld [vmem:[#allocation2 + $0x68] sm:$0xff]  ;;  %v350_v57 = vmul.f32 2.0, %v342_v46  ;;  %v344_v58 = vld [vmem:[#allocation2 + $0x78] sm:$0xff] }
  0x2b   : > { %322 = vst.msk [vmem:[#allocation2 + $0x60] sm:$0xff] %vm309_vm0, %v303_v40  ;;  %324 = vst.msk [vmem:[#allocation2 + $0x70] sm:$0xff] %vm309_vm0, %v305_v44  ;;  %v354_v51 = vadd.f32 %v362_v49, %v346_v38  ;;  %v363_v52 = vld [vmem:[#allocation2 + $0x20] sm:$0xff]  ;;  %v351_v1 = vmul.f32 2.0, %v343_v54  ;;  %v352_v5 = vmul.f32 2.0, %v344_v58 }
  0x2c   : > { %326 = vst.msk [vmem:[#allocation2 + $0x80] sm:$0xff] %vm309_vm0, %v307_v47  ;;  %v370_v55 = vadd.f32 %v362_v49, %v353_v48  ;;  %v355_v56 = vadd.f32 %v363_v52, %v347_v42 }
  0x2d   : > { %v371_v59 = vadd.f32 %v363_v52, %v354_v51  ;;  %v364_v60 = vld [vmem:[#allocation2 + $0x30] sm:$0xff] }
  0x2e   : > { %v378_v61 = vmul.f32 0.0625, %v370_v55  ;;  %v372_v62 = vadd.f32 %v364_v60, %v355_v56  ;;  %v356_v63 = vadd.f32 %v364_v60, %v348_v50  ;;  %v365_v0 = vld [vmem:[#allocation2 + $0x40] sm:$0xff] }
  0x2f   : > { %v379_v2 = vmul.f32 0.0625, %v371_v59  ;;  %v357_v3 = vadd.f32 %v365_v0, %v349_v53  ;;  %v366_v4 = vld [vmem:[#allocation2 + $0x50] sm:$0xff] }
  0x30   : > { %386 = vst.msk [vmem:[%s698_s17] sm:$0xff] %vm309_vm0, %v378_v61  ;;  %v380_v6 = vmul.f32 0.0625, %v372_v62  ;;  %v373_v7 = vadd.f32 %v365_v0, %v356_v63  ;;  %v358_v8 = vadd.f32 %v366_v4, %v350_v57 }
  0x31   : > { %387 = vst.msk [vmem:[%s698_s17 + $0x8] sm:$0xff] %vm309_vm0, %v379_v2  ;;  %v374_v9 = vadd.f32 %v366_v4, %v357_v3 }
  0x32   : > { %v367_v10 = vld [vmem:[#allocation2 + $0x60] sm:$0xff]  ;;  %388 = vst.msk [vmem:[%s698_s17 + $0x10] sm:$0xff] %vm309_vm0, %v380_v6  ;;  %v381_v11 = vmul.f32 0.0625, %v373_v7  ;;  %v368_v14 = vld [vmem:[#allocation2 + $0x70] sm:$0xff] }
  0x33   : > { %v375_v12 = vadd.f32 %v367_v10, %v358_v8  ;;  %v359_v13 = vadd.f32 %v367_v10, %v351_v1  ;;  %v382_v15 = vmul.f32 0.0625, %v374_v9  ;;  %v360_v16 = vadd.f32 %v368_v14, %v352_v5  ;;  %v369_v17 = vld [vmem:[#allocation2 + $0x80] sm:$0xff] }
  0x34   : > { %389 = vst.msk [vmem:[%s698_s17 + $0x18] sm:$0xff] %vm309_vm0, %v381_v11 }
  0x35   : > { %v383_v18 = vmul.f32 0.0625, %v375_v12  ;;  %v376_v19 = vadd.f32 %v368_v14, %v359_v13  ;;  %390 = vst.msk [vmem:[%s698_s17 + $0x20] sm:$0xff] %vm309_vm0, %v382_v15  ;;  %v377_v20 = vadd.f32 %v369_v17, %v360_v16 }
  0x37   : > { %391 = vst.msk [vmem:[%s698_s17 + $0x28] sm:$0xff] %vm309_vm0, %v383_v18  ;;  %v384_v21 = vmul.f32 0.0625, %v376_v19  ;;  %v385_v22 = vmul.f32 0.0625, %v377_v20 }
  0x39   : > { %392 = vst.msk [vmem:[%s698_s17 + $0x30] sm:$0xff] %vm309_vm0, %v384_v21  ;;  %393 = vst.msk [vmem:[%s698_s17 + $0x38] sm:$0xff] %vm309_vm0, %v385_v22 }
  0x3a PF: > { %s11_s8 = sadd.s32 1, %s588_s8   ;;  %s727_s6 = smov %s584_s7 }
  0x3b   : > { %p8_p5 = scmp.ge.s32.totalorder %s11_s8, 4   ;;  %s728_s7 = smov %s730_s9 }
  0x3d   :  { %10 = sbr.rel (!%p8_p5) target bundleno = 2 (0x2), region = 109 }

</bundles_post_ra>
